<compile_context>
chip_gen: v7x
topology: tpu7x:2x2x1
jax: 0.10.0
libtpu: 0.0.40
codegen_flags: <defaults>
</compile_context>

<pallas_src>
import jax
import jax.numpy as jnp
from jax.experimental import pallas as pl
from jax.experimental.pallas import tpu as pltpu

LN_EPS = 1e-5  # torch.nn.LayerNorm default eps


def _layernorm(x, gamma, beta):
    # x: (TN, H) f32, gamma/beta: (H,) f32.
    c = x - jnp.mean(x, axis=-1, keepdims=True)
    var = jnp.mean(c * c, axis=-1, keepdims=True)
    # Fold gamma into the rsqrt scale -> single mul-add epilogue.
    scale = gamma[None, :] * jax.lax.rsqrt(var + LN_EPS)
    return c * scale + beta[None, :]


def _make_kernel(num_dnn):
    def res_dnn_kernel(x_ref, w_ref, b_ref, g_ref, bt_ref, gf_ref, bf_ref, o_ref):
        x = x_ref[...].astype(jnp.float32)  # (TN, H)
        shortcut = x
        h = x

        # Static unrolled loop: num_dnn is a small Python int. Each iteration
        # indexes the param refs with a static index, so only one layer's
        # weights are live in vregs at a time.
        for i in range(num_dnn):
            # Linear: x @ W + b. Weights already bf16 (cast once in wrapper);
            # only the activation needs an in-kernel cast. f32 accumulation.
            y = jnp.dot(
                h.astype(jnp.bfloat16),
                w_ref[i],
                preferred_element_type=jnp.float32,
            )
            y = y + b_ref[i][None, :].astype(jnp.float32)
            # Dropout (eval mode) -> identity.
            y = jnp.tanh(y)
            h = _layernorm(
                y, g_ref[i].astype(jnp.float32), bt_ref[i].astype(jnp.float32)
            )

        h = shortcut + h
        h = jnp.tanh(h)
        h = _layernorm(
            h, gf_ref[0].astype(jnp.float32), bf_ref[0].astype(jnp.float32)
        )
        o_ref[...] = h.astype(o_ref.dtype)

    return res_dnn_kernel


def res_dnn_layer(x, weights, biases, ln_gamma, ln_beta, fin_gamma, fin_beta,
                  *, row_tile=None):
    """x: (N, H); weights: (num_dnn, H, H) stored (in, out);
    biases/ln_gamma/ln_beta: (num_dnn, H); fin_gamma/fin_beta: (H,)."""
    num_dnn, H, H2 = weights.shape
    assert H == H2 and x.shape[-1] == H
    N = x.shape[0]

    # Row tile: big enough to amortize per-step overhead (~0.35us/step) and
    # fill the MXU M dim, respecting the (8,128) rule on the sublane axis.
    if row_tile is None:
        row_tile = 512
    TN = min(row_tile, N)
    if TN != N:
        TN = max(8, (TN // 8) * 8)
    grid = (pl.cdiv(N, TN),)

    # Cast MXU operands once on the host side of the call (one XLA op), not
    # once per grid step inside the kernel. Also halves resident param VMEM.
    weights_bf16 = weights.astype(jnp.bfloat16)

    # Final LayerNorm params as (1, H) so every operand is >= 2-D.
    fin_gamma2 = fin_gamma.reshape(1, H)
    fin_beta2 = fin_beta.reshape(1, H)

    const2 = lambda i: (0, 0)       # resident across all grid steps
    const3 = lambda i: (0, 0, 0)

    # Explicit VMEM budget: resident params + double-buffered in/out row tiles
    # + headroom; clamped to fit v7x's 64 MiB physical VMEM.
    param_bytes = (2 * weights_bf16.size
                   + 4 * (biases.size + ln_gamma.size + ln_beta.size
                          + fin_gamma.size + fin_beta.size))
    tile_bytes = 4 * TN * H
    vmem_budget = int(param_bytes + 8 * tile_bytes + (8 << 20))
    vmem_budget = min(max(vmem_budget, 16 << 20), 64 << 20)

    kernel = _make_kernel(num_dnn)
    return pl.pallas_call(
        kernel,
        out_shape=jax.ShapeDtypeStruct((N, H), x.dtype),
        grid=grid,
        in_specs=[
            pl.BlockSpec((TN, H), lambda i: (i, 0)),        # x: tiled/pipelined
            pl.BlockSpec((num_dnn, H, H), const3),          # bf16 weights (resident)
            pl.BlockSpec((num_dnn, H), const2),             # biases
            pl.BlockSpec((num_dnn, H), const2),             # per-layer LN gamma
            pl.BlockSpec((num_dnn, H), const2),             # per-layer LN beta
            pl.BlockSpec((1, H), const2),                   # final LN gamma
            pl.BlockSpec((1, H), const2),                   # final LN beta
        ],
        out_specs=pl.BlockSpec((TN, H), lambda i: (i, 0)),
        compiler_params=pltpu.CompilerParams(
            dimension_semantics=("parallel",),
            vmem_limit_bytes=vmem_budget,
        ),
    )(x, weights_bf16, biases, ln_gamma, ln_beta, fin_gamma2, fin_beta2)


def res_dnn_layer_ref(x, weights, biases, ln_gamma, ln_beta, fin_gamma, fin_beta,
                      *, bf16_matmul=False):
    """Pure-JAX reference mirroring the PyTorch forward (eval mode).
    bf16_matmul=True mirrors the kernel's MXU numerics for a tight check."""
    shortcut = x.astype(jnp.float32)
    h = shortcut
    for i in range(weights.shape[0]):
        if bf16_matmul:
            y = jnp.dot(h.astype(jnp.bfloat16), weights[i].astype(jnp.bfloat16),
                        preferred_element_type=jnp.float32)
        else:
            y = h @ weights[i]
        y = y + biases[i]
        y = jnp.tanh(y)
        h = _layernorm(y, ln_gamma[i], ln_beta[i])
    h = shortcut + h
    h = jnp.tanh(h)
    return _layernorm(h, fin_gamma, fin_beta)


if __name__ == "__main__":
    # Small, module-consistent shapes: N rows of hidden vectors, hidden_size=32.
    N = 64
    H = 32
    NUM_DNN = 2

    key = jax.random.PRNGKey(0)
    kx, kw, kb = jax.random.split(key, 3)

    x = jax.random.normal(kx, (N, H), dtype=jnp.float32)
    # Deterministic parameter init (synthetic; no checkpoint loading).
    weights = jax.random.normal(kw, (NUM_DNN, H, H), dtype=jnp.float32) * (1.0 / jnp.sqrt(H))
    biases = jax.random.normal(kb, (NUM_DNN, H), dtype=jnp.float32) * 0.1
    ln_gamma = jnp.ones((NUM_DNN, H), dtype=jnp.float32)
    ln_beta = jnp.zeros((NUM_DNN, H), dtype=jnp.float32)
    fin_gamma = jnp.ones((H,), dtype=jnp.float32)
    fin_beta = jnp.zeros((H,), dtype=jnp.float32)

    # row_tile=16 so the 64-row input exercises a 4-step pipelined grid.
    out = res_dnn_layer(x, weights, biases, ln_gamma, ln_beta,
                        fin_gamma, fin_beta, row_tile=16)
    out = jax.block_until_ready(out)

    ref_matched = res_dnn_layer_ref(x, weights, biases, ln_gamma, ln_beta,
                                    fin_gamma, fin_beta, bf16_matmul=True)
    ref_f32 = res_dnn_layer_ref(x, weights, biases, ln_gamma, ln_beta,
                                fin_gamma, fin_beta, bf16_matmul=False)

    assert out.shape == (N, H)
    # Tight check vs a reference with matched (bf16-operand) matmul numerics.
    assert jnp.allclose(out, ref_matched, atol=2e-3, rtol=2e-3), \
        "Pallas output mismatch vs bf16-matmul reference"
    # Loose check vs the full-f32 PyTorch-semantics reference (LayerNorm
    # largely renormalizes the bf16 rounding error).
    assert jnp.allclose(out, ref_f32, atol=5e-2, rtol=5e-2), \
        "Pallas output mismatch vs f32 reference"

    print("KERNEL_OK")
</pallas_src>

<mosaic_0001>
module attributes {stable_mosaic.version = 11 : i64} {
  func.func @res_dnn_kernel(%arg0: i32, %arg1: memref<16x32xf32, #tpu.memory_space<vmem>>, %arg2: memref<2x32x32xbf16, #tpu.memory_space<vmem>>, %arg3: memref<2x32xf32, #tpu.memory_space<vmem>>, %arg4: memref<2x32xf32, #tpu.memory_space<vmem>>, %arg5: memref<2x32xf32, #tpu.memory_space<vmem>>, %arg6: memref<1x32xf32, #tpu.memory_space<vmem>>, %arg7: memref<1x32xf32, #tpu.memory_space<vmem>>, %arg8: memref<16x32xf32, #tpu.memory_space<vmem>>) attributes {dimension_semantics = [#tpu.dimension_semantics<parallel>], iteration_bounds = array<i64: 4>, scalar_prefetch = 0 : i64, scratch_operands = 0 : i64, tpu.core_type = #tpu.core_type<tc>, window_params = [{transform_indices = @transform_0, window_bounds = array<i64: 16, 32>}, {pipeline_mode = #tpu.pipeline_mode<synchronous>, transform_indices = @transform_1, window_bounds = array<i64: 2, 32, 32>}, {pipeline_mode = #tpu.pipeline_mode<synchronous>, transform_indices = @transform_2, window_bounds = array<i64: 2, 32>}, {pipeline_mode = #tpu.pipeline_mode<synchronous>, transform_indices = @transform_3, window_bounds = array<i64: 2, 32>}, {pipeline_mode = #tpu.pipeline_mode<synchronous>, transform_indices = @transform_4, window_bounds = array<i64: 2, 32>}, {pipeline_mode = #tpu.pipeline_mode<synchronous>, transform_indices = @transform_5, window_bounds = array<i64: 1, 32>}, {pipeline_mode = #tpu.pipeline_mode<synchronous>, transform_indices = @transform_6, window_bounds = array<i64: 1, 32>}, {transform_indices = @transform_7, window_bounds = array<i64: 16, 32>}]} {
    %c0 = arith.constant 0 : index
    %c0_0 = arith.constant 0 : index
    %0 = vector.load %arg1[%c0, %c0_0] : memref<16x32xf32, #tpu.memory_space<vmem>>, vector<16x32xf32>
    %1 = arith.truncf %0 : vector<16x32xf32> to vector<16x32xbf16>
    %c0_1 = arith.constant 0 : index
    %c0_2 = arith.constant 0 : index
    %c0_3 = arith.constant 0 : index
    %2 = vector.load %arg2[%c0_1, %c0_2, %c0_3] : memref<2x32x32xbf16, #tpu.memory_space<vmem>>, vector<1x32x32xbf16>
    %3 = vector.shape_cast %2 : vector<1x32x32xbf16> to vector<32x32xbf16>
    %cst = arith.constant dense<0.000000e+00> : vector<16x32xf32>
    %4 = tpu.matmul %1, %3, %cst {dimension_numbers = #tpu.dot_dimension_numbers<[1], [0], [0], [1], [0, 0, 1, 1], [], []>} : vector<16x32xbf16>, vector<32x32xbf16>, vector<16x32xf32> -> vector<16x32xf32>
    %c0_4 = arith.constant 0 : index
    %c0_5 = arith.constant 0 : index
    %5 = vector.load %arg3[%c0_4, %c0_5] : memref<2x32xf32, #tpu.memory_space<vmem>>, vector<1x32xf32>
    %6 = vector.shape_cast %5 : vector<1x32xf32> to vector<32xf32>
    %7 = vector.shape_cast %6 : vector<32xf32> to vector<1x32xf32>
    %8 = vector.broadcast %7 : vector<1x32xf32> to vector<16x32xf32>
    %9 = arith.addf %4, %8 : vector<16x32xf32>
    %10 = math.tanh %9 : vector<16x32xf32>
    %c0_6 = arith.constant 0 : index
    %c0_7 = arith.constant 0 : index
    %11 = vector.load %arg4[%c0_6, %c0_7] : memref<2x32xf32, #tpu.memory_space<vmem>>, vector<1x32xf32>
    %12 = vector.shape_cast %11 : vector<1x32xf32> to vector<32xf32>
    %c0_8 = arith.constant 0 : index
    %c0_9 = arith.constant 0 : index
    %13 = vector.load %arg5[%c0_8, %c0_9] : memref<2x32xf32, #tpu.memory_space<vmem>>, vector<1x32xf32>
    %14 = vector.shape_cast %13 : vector<1x32xf32> to vector<32xf32>
    %cst_10 = arith.constant dense<0.000000e+00> : vector<16xf32>
    %15 = vector.multi_reduction <add>, %10, %cst_10 [1] : vector<16x32xf32> to vector<16xf32>
    %16 = vector.shape_cast %15 : vector<16xf32> to vector<16x1xf32>
    %cst_11 = arith.constant 3.200000e+01 : f32
    %17 = vector.broadcast %cst_11 : f32 to vector<16x1xf32>
    %18 = arith.divf %16, %17 : vector<16x1xf32>
    %19 = vector.broadcast %18 : vector<16x1xf32> to vector<16x32xf32>
    %20 = arith.subf %10, %19 : vector<16x32xf32>
    %21 = arith.mulf %20, %20 : vector<16x32xf32>
    %cst_12 = arith.constant dense<0.000000e+00> : vector<16xf32>
    %22 = vector.multi_reduction <add>, %21, %cst_12 [1] : vector<16x32xf32> to vector<16xf32>
    %23 = vector.shape_cast %22 : vector<16xf32> to vector<16x1xf32>
    %cst_13 = arith.constant 3.200000e+01 : f32
    %24 = vector.broadcast %cst_13 : f32 to vector<16x1xf32>
    %25 = arith.divf %23, %24 : vector<16x1xf32>
    %26 = vector.shape_cast %12 : vector<32xf32> to vector<1x32xf32>
    %cst_14 = arith.constant 9.99999974E-6 : f32
    %27 = vector.broadcast %cst_14 : f32 to vector<16x1xf32>
    %28 = arith.addf %25, %27 : vector<16x1xf32>
    %29 = math.rsqrt %28 : vector<16x1xf32>
    %30 = vector.broadcast %26 : vector<1x32xf32> to vector<16x32xf32>
    %31 = vector.broadcast %29 : vector<16x1xf32> to vector<16x32xf32>
    %32 = arith.mulf %30, %31 : vector<16x32xf32>
    %33 = arith.mulf %20, %32 : vector<16x32xf32>
    %34 = vector.shape_cast %14 : vector<32xf32> to vector<1x32xf32>
    %35 = vector.broadcast %34 : vector<1x32xf32> to vector<16x32xf32>
    %36 = arith.addf %33, %35 : vector<16x32xf32>
    %37 = arith.truncf %36 : vector<16x32xf32> to vector<16x32xbf16>
    %c1 = arith.constant 1 : index
    %c0_15 = arith.constant 0 : index
    %c0_16 = arith.constant 0 : index
    %38 = vector.load %arg2[%c1, %c0_15, %c0_16] : memref<2x32x32xbf16, #tpu.memory_space<vmem>>, vector<1x32x32xbf16>
    %39 = vector.shape_cast %38 : vector<1x32x32xbf16> to vector<32x32xbf16>
    %cst_17 = arith.constant dense<0.000000e+00> : vector<16x32xf32>
    %40 = tpu.matmul %37, %39, %cst_17 {dimension_numbers = #tpu.dot_dimension_numbers<[1], [0], [0], [1], [0, 0, 1, 1], [], []>} : vector<16x32xbf16>, vector<32x32xbf16>, vector<16x32xf32> -> vector<16x32xf32>
    %c1_18 = arith.constant 1 : index
    %c0_19 = arith.constant 0 : index
    %41 = vector.load %arg3[%c1_18, %c0_19] : memref<2x32xf32, #tpu.memory_space<vmem>>, vector<1x32xf32>
    %42 = vector.shape_cast %41 : vector<1x32xf32> to vector<32xf32>
    %43 = vector.shape_cast %42 : vector<32xf32> to vector<1x32xf32>
    %44 = vector.broadcast %43 : vector<1x32xf32> to vector<16x32xf32>
    %45 = arith.addf %40, %44 : vector<16x32xf32>
    %46 = math.tanh %45 : vector<16x32xf32>
    %c1_20 = arith.constant 1 : index
    %c0_21 = arith.constant 0 : index
    %47 = vector.load %arg4[%c1_20, %c0_21] : memref<2x32xf32, #tpu.memory_space<vmem>>, vector<1x32xf32>
    %48 = vector.shape_cast %47 : vector<1x32xf32> to vector<32xf32>
    %c1_22 = arith.constant 1 : index
    %c0_23 = arith.constant 0 : index
    %49 = vector.load %arg5[%c1_22, %c0_23] : memref<2x32xf32, #tpu.memory_space<vmem>>, vector<1x32xf32>
    %50 = vector.shape_cast %49 : vector<1x32xf32> to vector<32xf32>
    %cst_24 = arith.constant dense<0.000000e+00> : vector<16xf32>
    %51 = vector.multi_reduction <add>, %46, %cst_24 [1] : vector<16x32xf32> to vector<16xf32>
    %52 = vector.shape_cast %51 : vector<16xf32> to vector<16x1xf32>
    %cst_25 = arith.constant 3.200000e+01 : f32
    %53 = vector.broadcast %cst_25 : f32 to vector<16x1xf32>
    %54 = arith.divf %52, %53 : vector<16x1xf32>
    %55 = vector.broadcast %54 : vector<16x1xf32> to vector<16x32xf32>
    %56 = arith.subf %46, %55 : vector<16x32xf32>
    %57 = arith.mulf %56, %56 : vector<16x32xf32>
    %cst_26 = arith.constant dense<0.000000e+00> : vector<16xf32>
    %58 = vector.multi_reduction <add>, %57, %cst_26 [1] : vector<16x32xf32> to vector<16xf32>
    %59 = vector.shape_cast %58 : vector<16xf32> to vector<16x1xf32>
    %cst_27 = arith.constant 3.200000e+01 : f32
    %60 = vector.broadcast %cst_27 : f32 to vector<16x1xf32>
    %61 = arith.divf %59, %60 : vector<16x1xf32>
    %62 = vector.shape_cast %48 : vector<32xf32> to vector<1x32xf32>
    %cst_28 = arith.constant 9.99999974E-6 : f32
    %63 = vector.broadcast %cst_28 : f32 to vector<16x1xf32>
    %64 = arith.addf %61, %63 : vector<16x1xf32>
    %65 = math.rsqrt %64 : vector<16x1xf32>
    %66 = vector.broadcast %62 : vector<1x32xf32> to vector<16x32xf32>
    %67 = vector.broadcast %65 : vector<16x1xf32> to vector<16x32xf32>
    %68 = arith.mulf %66, %67 : vector<16x32xf32>
    %69 = arith.mulf %56, %68 : vector<16x32xf32>
    %70 = vector.shape_cast %50 : vector<32xf32> to vector<1x32xf32>
    %71 = vector.broadcast %70 : vector<1x32xf32> to vector<16x32xf32>
    %72 = arith.addf %69, %71 : vector<16x32xf32>
    %73 = arith.addf %0, %72 : vector<16x32xf32>
    %74 = math.tanh %73 : vector<16x32xf32>
    %c0_29 = arith.constant 0 : index
    %c0_30 = arith.constant 0 : index
    %75 = vector.load %arg6[%c0_29, %c0_30] : memref<1x32xf32, #tpu.memory_space<vmem>>, vector<1x32xf32>
    %76 = vector.shape_cast %75 : vector<1x32xf32> to vector<32xf32>
    %c0_31 = arith.constant 0 : index
    %c0_32 = arith.constant 0 : index
    %77 = vector.load %arg7[%c0_31, %c0_32] : memref<1x32xf32, #tpu.memory_space<vmem>>, vector<1x32xf32>
    %78 = vector.shape_cast %77 : vector<1x32xf32> to vector<32xf32>
    %cst_33 = arith.constant dense<0.000000e+00> : vector<16xf32>
    %79 = vector.multi_reduction <add>, %74, %cst_33 [1] : vector<16x32xf32> to vector<16xf32>
    %80 = vector.shape_cast %79 : vector<16xf32> to vector<16x1xf32>
    %cst_34 = arith.constant 3.200000e+01 : f32
    %81 = vector.broadcast %cst_34 : f32 to vector<16x1xf32>
    %82 = arith.divf %80, %81 : vector<16x1xf32>
    %83 = vector.broadcast %82 : vector<16x1xf32> to vector<16x32xf32>
    %84 = arith.subf %74, %83 : vector<16x32xf32>
    %85 = arith.mulf %84, %84 : vector<16x32xf32>
    %cst_35 = arith.constant dense<0.000000e+00> : vector<16xf32>
    %86 = vector.multi_reduction <add>, %85, %cst_35 [1] : vector<16x32xf32> to vector<16xf32>
    %87 = vector.shape_cast %86 : vector<16xf32> to vector<16x1xf32>
    %cst_36 = arith.constant 3.200000e+01 : f32
    %88 = vector.broadcast %cst_36 : f32 to vector<16x1xf32>
    %89 = arith.divf %87, %88 : vector<16x1xf32>
    %90 = vector.shape_cast %76 : vector<32xf32> to vector<1x32xf32>
    %cst_37 = arith.constant 9.99999974E-6 : f32
    %91 = vector.broadcast %cst_37 : f32 to vector<16x1xf32>
    %92 = arith.addf %89, %91 : vector<16x1xf32>
    %93 = math.rsqrt %92 : vector<16x1xf32>
    %94 = vector.broadcast %90 : vector<1x32xf32> to vector<16x32xf32>
    %95 = vector.broadcast %93 : vector<16x1xf32> to vector<16x32xf32>
    %96 = arith.mulf %94, %95 : vector<16x32xf32>
    %97 = arith.mulf %84, %96 : vector<16x32xf32>
    %98 = vector.shape_cast %78 : vector<32xf32> to vector<1x32xf32>
    %99 = vector.broadcast %98 : vector<1x32xf32> to vector<16x32xf32>
    %100 = arith.addf %97, %99 : vector<16x32xf32>
    %c0_38 = arith.constant 0 : index
    %c0_39 = arith.constant 0 : index
    %101 = vector.load %arg8[%c0_38, %c0_39] : memref<16x32xf32, #tpu.memory_space<vmem>>, vector<16x32xf32>
    tpu.vector_store %arg8[%c0_38, %c0_39], %100 {strides = array<i32>} : memref<16x32xf32, #tpu.memory_space<vmem>>, vector<16x32xf32>,
    return
  }
  func.func @transform_0(%arg0: i32) -> (i32, i32) {
    %c0_i32 = arith.constant 0 : i32
    %c0_i32_0 = arith.constant 0 : i32
    return %arg0, %c0_i32 : i32, i32
  }
  func.func @transform_1(%arg0: i32) -> (i32, i32, i32) {
    %c0_i32 = arith.constant 0 : i32
    %c0_i32_0 = arith.constant 0 : i32
    %c0_i32_1 = arith.constant 0 : i32
    %c0_i32_2 = arith.constant 0 : i32
    return %c0_i32, %c0_i32_0, %c0_i32_1 : i32, i32, i32
  }
  func.func @transform_2(%arg0: i32) -> (i32, i32) {
    %c0_i32 = arith.constant 0 : i32
    %c0_i32_0 = arith.constant 0 : i32
    %c0_i32_1 = arith.constant 0 : i32
    return %c0_i32, %c0_i32_0 : i32, i32
  }
  func.func @transform_3(%arg0: i32) -> (i32, i32) {
    %c0_i32 = arith.constant 0 : i32
    %c0_i32_0 = arith.constant 0 : i32
    %c0_i32_1 = arith.constant 0 : i32
    return %c0_i32, %c0_i32_0 : i32, i32
  }
  func.func @transform_4(%arg0: i32) -> (i32, i32) {
    %c0_i32 = arith.constant 0 : i32
    %c0_i32_0 = arith.constant 0 : i32
    %c0_i32_1 = arith.constant 0 : i32
    return %c0_i32, %c0_i32_0 : i32, i32
  }
  func.func @transform_5(%arg0: i32) -> (i32, i32) {
    %c0_i32 = arith.constant 0 : i32
    %c0_i32_0 = arith.constant 0 : i32
    %c0_i32_1 = arith.constant 0 : i32
    return %c0_i32, %c0_i32_0 : i32, i32
  }
  func.func @transform_6(%arg0: i32) -> (i32, i32) {
    %c0_i32 = arith.constant 0 : i32
    %c0_i32_0 = arith.constant 0 : i32
    %c0_i32_1 = arith.constant 0 : i32
    return %c0_i32, %c0_i32_0 : i32, i32
  }
  func.func @transform_7(%arg0: i32) -> (i32, i32) {
    %c0_i32 = arith.constant 0 : i32
    %c0_i32_0 = arith.constant 0 : i32
    return %arg0, %c0_i32 : i32, i32
  }
}

</mosaic_0001>

<bundles_post_ra>
// kernel: tpu_custom_call.1
= control target key start
LH: loop header
LB: loop body
LE: loop exit
PB: predicated region body
PF: predicated region fallthrough
CT: control target
= control target key end

     0   :  { %s749_s24 = smov 0   ;;  %s833_s0 = inlined_call_operand.vmem [shape: f32[64,32], index: 0, kind: input, shape index: {}]   ;;  %s834_s1 = inlined_call_operand.vmem [shape: bf16[2,32,32], index: 1, kind: input, shape index: {}]   ;;  %s835_s2 = inlined_call_operand.vmem [shape: f32[2,32], index: 2, kind: input, shape index: {}]   ;;  %s836_s3 = inlined_call_operand.vmem [shape: f32[2,32], index: 3, kind: input, shape index: {}]   ;;  %s837_s4 = inlined_call_operand.vmem [shape: f32[2,32], index: 4, kind: input, shape index: {}]   ;;  %s838_s5 = inlined_call_operand.vmem [shape: f32[1,32], index: 5, kind: input, shape index: {}]   ;;  %s839_s6 = inlined_call_operand.vmem [shape: f32[1,32], index: 6, kind: input, shape index: {}]   ;;  %s840_s7 = inlined_call_operand.vmem [shape: f32[64,32], index: 7, kind: output, shape index: {}]  }
   0x1 LB: > { %s610_s25 = sadd.s32 4294967295, %s705_s24   ;;  %p614_p0 = scmp.ge.s32.totalorder %s705_s24, 1  ;;  %s705_s24 = sphi %s749_s24, %s17_s24  }
   0x2   : > { %p238_p1 = scmp.lt.s32.totalorder %s705_s24, 5 }
   0x4   : > { %p239_p2 = pnand %p614_p0, %p238_p1 }
   0x5   : > { %v671_v0 = vld [vmem:[%s834_s1] sm:$0xff] (!%p239_p2)   ;;  %v707_v1 = vmov (!%p239_p2), 0.0   ;;  %v672_v2 = vld [vmem:[%s834_s1 + $0x8] sm:$0xff] (!%p239_p2)   ;;  %vm708_vm0 = vmmov (!%p239_p2), 0   ;;  %s615_s30 = sshll.u32 (!%p239_p2), %s610_s25, 1  ;;  %vm307_vm1 = vcmask (!%p239_p2), 261120  }
   0x6   : > { %242 = sbr.rel (%p239_p2) target bundleno = 1430 (0x596), region = 48  ;;  %645 = vmatprep.subr.bf16.mxu0 (!%p239_p2), %v707_v1  ;;  %653 = vmatprep.subr.bf16.mxu1 (!%p239_p2), %v707_v1  ;;  %p271_p3 = scmp.lt.s32.totalorder (!%p239_p2), %s615_s30, 7  ;;  %v619_v6 = vld [vmem:[%s835_s2] ss:$0 sm:$0xff] (!%p239_p2)  ;;  %v673_v27 = vld [vmem:[%s834_s1 + $0x10] sm:$0xff] (!%p239_p2)   ;;  %v674_v28 = vld [vmem:[%s834_s1 + $0x18] sm:$0xff] (!%p239_p2)  }
   0x7   : > { %646 = vmatpush3.bf16.msra.mxu0 (!%p239_p2), %v671_v0  ;;  %649 = vmatprep.mubr.msk.bf16.mxu0 (!%p239_p2), %vm708_vm0, %v707_v1  ;;  %v623_v35 = vld [vmem:[%s836_s3] ss:$0 sm:$0xff] (!%p239_p2)  ;;  %v629_v46 = vld [vmem:[%s835_s2 + $0x1] ss:$0 sm:$0xff] (!%p239_p2) }
   0x8   : > { %647 = vmatprep.subr.bf16.mxu0 (!%p239_p2), %v707_v1  ;;  %657 = vmatprep.mubr.msk.bf16.mxu1 (!%p239_p2), %vm708_vm0, %v707_v1  ;;  %v624_v41 = vld [vmem:[%s837_s4] ss:$0 sm:$0xff] (!%p239_p2) }
   0x9   : > { %654 = vmatpush3.bf16.msra.mxu1 (!%p239_p2), %v673_v27 }
   0xa   : > { %655 = vmatprep.subr.bf16.mxu1 (!%p239_p2), %v707_v1 }
   0xb   : > { %648 = vmatpush3.bf16.msra.mxu0 (!%p239_p2), %v672_v2 }
   0xd   : > { %s842_s30 = smov (!%p271_p3, %s615_s30), 7  ;;  %656 = vmatpush3.bf16.msra.mxu1 %v674_v28 }
   0xe   : > { %s616_s8 = sshll.u32 %s842_s30, 3 }
   0xf   : > { %s274_s11 = scalar_lea.vmem %s833_s0, %s616_s8  ;;  %s280_s14 = scalar_lea.vmem %s840_s7, %s616_s8 }
  0x10   : > { %v771_v3 = vld [vmem:[%s274_s11] sm:$0xff]  ;;  %v773_v4 = vld [vmem:[%s274_s11 + $0x8] sm:$0xff] }
  0x11   : > { %v285_v5 = vpack.c.bf16 %v773_v4, %v771_v3 }
  0x13   : > { %650 = vmatmul.mubr.msk.bf16.vlgmr.msra.gmra.mrb[0].mxu0 %vm307_vm1, %v285_v5 }
  0xe6   : > { %v345_v7 = vpop.f32.mrb[0].mxu0 }
  0xe7   : > { %v346_v8 = vadd.f32 %v619_v6, %v345_v7  ;;  %v651_v9 = vpop.f32.mrb[1].mxu0 }
  0xe8   : > { %v348_v10 = vpop.f32.mrb[2].mxu0 }
  0xe9   : > { %675 = vtanh.f32 %v346_v8  ;;  %v349_v11 = vadd.f32 %v619_v6, %v348_v10  ;;  %v652_v12 = vpop.f32.mrb[3].mxu0 }
  0xeb   : > { %677 = vtanh.f32 %v349_v11  ;;  %v633_v11 = vld [vmem:[%s836_s3 + $0x1] ss:$0 sm:$0xff] }
  0xf3   : > { %v676_v13 = vpop.eup %675 }
  0xf4   : > { %v356_v14 = vsel %vm307_vm1, %v676_v13, 0.0 }
  0xf5   : > { %v678_v15 = vpop.eup %677  ;;  %357 = vadd.xlane.f32.xlu0 %v356_v14 }
  0xf6   : > { %v359_v16 = vsel %vm307_vm1, %v678_v15, 0.0 }
  0xf9   : > { %360 = vadd.xlane.f32.xlu0 %v359_v16 }
 0x182   : > { %v358_v17 = vpop.xlane.xlu0 %357 }
 0x183   : > { %v363_v18 = vmul.f32 0.03125, %v358_v17 }
 0x185   : > { %v365_v19 = vsub.f32 %v676_v13, %v363_v18 }
 0x186   : > { %v361_v20 = vpop.xlane.xlu0 %360 }
 0x187   : > { %v364_v21 = vmul.f32 0.03125, %v361_v20  ;;  %v367_v22 = vmul.f32 %v365_v19, %v365_v19 }
 0x189   : > { %v366_v23 = vsub.f32 %v678_v15, %v364_v21  ;;  %v369_v24 = vsel %vm307_vm1, %v367_v22, 0.0  ;;  %v634_v15 = vld [vmem:[%s837_s4 + $0x1] ss:$0 sm:$0xff] }
 0x18a   : > { %370 = vadd.xlane.f32.xlu1 %v369_v24 }
 0x18b   : > { %v368_v25 = vmul.f32 %v366_v23, %v366_v23 }
 0x18d   : > { %v372_v26 = vsel %vm307_vm1, %v368_v25, 0.0 }
 0x18e   : > { %373 = vadd.xlane.f32.xlu1 %v372_v26 }
 0x217   : > { %v371_v29 = vpop.xlane.xlu1 %370 }
 0x218   : > { %v375_v30 = vmul.f32 0.03125, %v371_v29 }
 0x21a   : > { %v377_v31 = vadd.f32 1e-05, %v375_v30 }
 0x21b   : > { %v374_v32 = vpop.xlane.xlu1 %373 }
 0x21c   : > { %679 = vrsqrt.f32 %v377_v31  ;;  %v376_v33 = vmul.f32 0.03125, %v374_v32 }
 0x21e   : > { %v378_v34 = vadd.f32 1e-05, %v376_v33 }
 0x220   : > { %681 = vrsqrt.f32 %v378_v34 }
 0x226   : > { %v680_v36 = vpop.eup %679 }
 0x227   : > { %v385_v37 = vmul.f32 %v680_v36, %v623_v35 }
 0x229   : > { %v387_v40 = vmul.f32 %v385_v37, %v365_v19 }
 0x22a   : > { %v682_v38 = vpop.eup %681 }
 0x22b   : > { %v386_v39 = vmul.f32 %v682_v38, %v623_v35  ;;  %v393_v43 = vadd.f32 %v624_v41, %v387_v40 }
 0x22d   : > { %v388_v42 = vmul.f32 %v386_v39, %v366_v23 }
 0x22f   : > { %v394_v44 = vadd.f32 %v624_v41, %v388_v42  ;;  %v635_v41 = vld [vmem:[%s838_s5] ss:$0 sm:$0xff] }
 0x231   : > { %v395_v45 = vpack.c.bf16 %v394_v44, %v393_v43 }
 0x233   : > { %658 = vmatmul.mubr.msk.bf16.vlgmr.msra.gmra.mrb[0].mxu1 %vm307_vm1, %v395_v45  ;;  %v636_v45 = vld [vmem:[%s839_s6] ss:$0 sm:$0xff] }
 0x306   : > { %v455_v47 = vpop.f32.mrb[0].mxu1 }
 0x307   : > { %v456_v48 = vadd.f32 %v629_v46, %v455_v47  ;;  %v659_v49 = vpop.f32.mrb[1].mxu1 }
 0x308   : > { %v458_v50 = vpop.f32.mrb[2].mxu1 }
 0x309   : > { %683 = vtanh.f32 %v456_v48  ;;  %v459_v51 = vadd.f32 %v629_v46, %v458_v50  ;;  %v660_v52 = vpop.f32.mrb[3].mxu1 }
 0x30b   : > { %685 = vtanh.f32 %v459_v51 }
 0x313   : > { %v684_v53 = vpop.eup %683 }
 0x314   : > { %v466_v54 = vsel %vm307_vm1, %v684_v53, 0.0 }
 0x315   : > { %v686_v55 = vpop.eup %685  ;;  %467 = vadd.xlane.f32.xlu0 %v466_v54 }
 0x316   : > { %v469_v56 = vsel %vm307_vm1, %v686_v55, 0.0 }
 0x317   : > { %470 = vadd.xlane.f32.xlu1 %v469_v56 }
 0x3a2   : > { %v468_v57 = vpop.xlane.xlu0 %467 }
 0x3a3   : > { %v472_v58 = vmul.f32 0.03125, %v468_v57 }
 0x3a4   : > { %v471_v59 = vpop.xlane.xlu1 %470 }
 0x3a5   : > { %v474_v60 = vsub.f32 %v684_v53, %v472_v58  ;;  %v473_v61 = vmul.f32 0.03125, %v471_v59 }
 0x3a7   : > { %v475_v62 = vsub.f32 %v686_v55, %v473_v61  ;;  %v476_v63 = vmul.f32 %v474_v60, %v474_v60 }
 0x3a9   : > { %v478_v0 = vsel %vm307_vm1, %v476_v63, 0.0  ;;  %v477_v1 = vmul.f32 %v475_v62, %v475_v62 }
 0x3aa   : > { %479 = vadd.xlane.f32.xlu0 %v478_v0 }
 0x3ab   : > { %v481_v2 = vsel %vm307_vm1, %v477_v1, 0.0 }
 0x3ac   : > { %482 = vadd.xlane.f32.xlu1 %v481_v2 }
 0x437   : > { %v480_v5 = vpop.xlane.xlu0 %479 }
 0x438   : > { %v484_v6 = vmul.f32 0.03125, %v480_v5 }
 0x439   : > { %v483_v7 = vpop.xlane.xlu1 %482 }
 0x43a   : > { %v486_v8 = vadd.f32 1e-05, %v484_v6  ;;  %v485_v9 = vmul.f32 0.03125, %v483_v7 }
 0x43c   : > { %687 = vrsqrt.f32 %v486_v8  ;;  %v487_v10 = vadd.f32 1e-05, %v485_v9 }
 0x43e   : > { %689 = vrsqrt.f32 %v487_v10 }
 0x446   : > { %v688_v12 = vpop.eup %687 }
 0x447   : > { %v494_v13 = vmul.f32 %v688_v12, %v633_v11 }
 0x448   : > { %v690_v14 = vpop.eup %689 }
 0x449   : > { %v496_v16 = vmul.f32 %v494_v13, %v474_v60  ;;  %v495_v17 = vmul.f32 %v690_v14, %v633_v11 }
 0x44b   : > { %v497_v18 = vmul.f32 %v495_v17, %v475_v62  ;;  %v502_v19 = vadd.f32 %v634_v15, %v496_v16 }
 0x44d   : > { %v504_v20 = vadd.f32 %v502_v19, %v771_v3  ;;  %v503_v21 = vadd.f32 %v634_v15, %v497_v18 }
 0x44f   : > { %691 = vtanh.f32 %v504_v20  ;;  %v505_v22 = vadd.f32 %v503_v21, %v773_v4 }
 0x451   : > { %693 = vtanh.f32 %v505_v22 }
 0x459   : > { %v692_v23 = vpop.eup %691 }
 0x45a   : > { %v510_v24 = vsel %vm307_vm1, %v692_v23, 0.0 }
 0x45b   : > { %v694_v25 = vpop.eup %693  ;;  %511 = vadd.xlane.f32.xlu0 %v510_v24 }
 0x45c   : > { %v513_v26 = vsel %vm307_vm1, %v694_v25, 0.0 }
 0x45d   : > { %514 = vadd.xlane.f32.xlu1 %v513_v26 }
 0x4e8   : > { %v512_v27 = vpop.xlane.xlu0 %511 }
 0x4e9   : > { %v516_v28 = vmul.f32 0.03125, %v512_v27 }
 0x4ea   : > { %v515_v29 = vpop.xlane.xlu1 %514 }
 0x4eb   : > { %v518_v30 = vsub.f32 %v692_v23, %v516_v28  ;;  %v517_v31 = vmul.f32 0.03125, %v515_v29 }
 0x4ed   : > { %v519_v32 = vsub.f32 %v694_v25, %v517_v31  ;;  %v520_v3 = vmul.f32 %v518_v30, %v518_v30 }
 0x4ef   : > { %v522_v33 = vsel %vm307_vm1, %v520_v3, 0.0  ;;  %v521_v34 = vmul.f32 %v519_v32, %v519_v32 }
 0x4f0   : > { %523 = vadd.xlane.f32.xlu0 %v522_v33 }
 0x4f1   : > { %v525_v4 = vsel %vm307_vm1, %v521_v34, 0.0 }
 0x4f2   : > { %526 = vadd.xlane.f32.xlu1 %v525_v4 }
 0x57d   : > { %v524_v35 = vpop.xlane.xlu0 %523 }
 0x57e   : > { %v528_v36 = vmul.f32 0.03125, %v524_v35 }
 0x57f   : > { %v527_v37 = vpop.xlane.xlu1 %526 }
 0x580   : > { %v530_v38 = vadd.f32 1e-05, %v528_v36  ;;  %v529_v39 = vmul.f32 0.03125, %v527_v37 }
 0x582   : > { %695 = vrsqrt.f32 %v530_v38  ;;  %v531_v40 = vadd.f32 1e-05, %v529_v39 }
 0x584   : > { %697 = vrsqrt.f32 %v531_v40 }
 0x58c   : > { %v696_v42 = vpop.eup %695 }
 0x58d   : > { %v540_v43 = vmul.f32 %v696_v42, %v635_v41 }
 0x58e   : > { %v698_v44 = vpop.eup %697 }
 0x58f   : > { %v542_v46 = vmul.f32 %v540_v43, %v518_v30  ;;  %v541_v47 = vmul.f32 %v698_v44, %v635_v41 }
 0x591   : > { %v550_v48 = vadd.f32 %v636_v45, %v542_v46  ;;  %v543_v49 = vmul.f32 %v541_v47, %v519_v32 }
 0x593   : > { %552 = vst.msk [vmem:[%s280_s14] sm:$0xff] %vm307_vm1, %v550_v48  ;;  %v551_v50 = vadd.f32 %v636_v45, %v543_v49 }
 0x595   : > { %553 = vst.msk [vmem:[%s280_s14 + $0x8] sm:$0xff] %vm307_vm1, %v551_v50 }
 0x596 PF: > { %s17_s24 = sadd.s32 1, %s705_s24  }
 0x597   : > { %p14_p4 = scmp.ge.s32.totalorder %s17_s24, 6  }
 0x599   :  { %16 = sbr.rel (!%p14_p4) target bundleno = 1 (0x1), region = 79 }

</bundles_post_ra>
